<compile_context>
chip_gen: v6e
topology: v6e:2x2x1
jax: 0.10.0
libtpu: 0.0.40
codegen_flags: <defaults>
</compile_context>

<pallas_src>
import functools

import jax
import jax.numpy as jnp
from jax import lax
from jax.experimental import pallas as pl
from jax.experimental.pallas import tpu as pltpu

LANE = 128


def _round_up(x, m):
    return (x + m - 1) // m * m


def _vmem_capacity_bytes():
    try:
        return int(pltpu.get_tpu_info().vmem_capacity_bytes)
    except Exception:
        return 64 * 1024 * 1024      # conservative default (v7x per-core VMEM)


def _const_spec(shape, single_buffer):
    """BlockSpec for grid-invariant operands (constant index_map).

    When supported, single-buffer them: re-fetch is skipped anyway, so double
    buffering only wastes VMEM that is better spent on the x/out tiles.
    """
    index_map = lambda *_: (0,) * len(shape)
    if single_buffer:
        return pl.BlockSpec(shape, index_map, pipeline_mode=pl.Buffered(1))
    return pl.BlockSpec(shape, index_map)


def _coefs(theta, w1t_ref, b1_ref, wht_ref, bh_ref):
    """theta: (Bt, C) f32 -> 2*sigmoid(fc2(relu(fc1(theta))))-1, shape (Bt, 2k*C)."""
    h = jnp.dot(theta, w1t_ref[...], preferred_element_type=jnp.float32) + b1_ref[...]
    h = jnp.maximum(h, 0.0)
    t = jnp.dot(h, wht_ref[...], preferred_element_type=jnp.float32) + bh_ref[...]
    return 2.0 * jax.nn.sigmoid(t) - 1.0


# --------------------------------------------------------------------------- #
# Fused single-pass kernel: whole (Bt, C, HWp) slab per grid step.
# --------------------------------------------------------------------------- #
def _dyrelu_fused_kernel(x_ref, w1t_ref, b1_ref, wht_ref, bh_ref, o_ref, *,
                         true_hw, k):
    C = x_ref.shape[1]
    xf = x_ref[...].astype(jnp.float32)                   # (Bt, C, HWp), f32 math
    # global average pool; padded lanes are zero so sum/true_hw is exact.
    theta = jnp.sum(xf, axis=-1) * (1.0 / true_hw)        # (Bt, C)
    t = _coefs(theta, w1t_ref, b1_ref, wht_ref, bh_ref)   # (Bt, 2k*C)
    # lambdas = [1]*k + [0.5]*k, init_v = [1] + [0]*(2k-1); max over k pieces.
    out = None
    for j in range(k):
        a = (t[:, j * C:(j + 1) * C] + (1.0 if j == 0 else 0.0))[:, :, None]
        c = (t[:, (k + j) * C:(k + j + 1) * C] * 0.5)[:, :, None]
        y = xf * a + c
        out = y if out is None else jnp.maximum(out, y)
    o_ref[...] = out.astype(o_ref.dtype)


# --------------------------------------------------------------------------- #
# Two-pass path (for slabs that do not fit VMEM, e.g. large C*HW on v7x).
# Pass 1: reduce x over spatial tiles -> per-(batch, channel) coefficients.
# --------------------------------------------------------------------------- #
def _dyrelu_coef_kernel(x_ref, w1t_ref, b1_ref, wht_ref, bh_ref, coef_ref,
                        acc_ref, *, true_hw, k):
    C = x_ref.shape[1]
    hw_i = pl.program_id(1)

    @pl.when(hw_i == 0)
    def _():
        acc_ref[...] = jnp.zeros_like(acc_ref)

    acc_ref[...] += jnp.sum(x_ref[...].astype(jnp.float32), axis=-1)

    @pl.when(hw_i == pl.num_programs(1) - 1)
    def _():
        theta = acc_ref[...] * (1.0 / true_hw)                   # (Bt, C)
        t = _coefs(theta, w1t_ref, b1_ref, wht_ref, bh_ref)      # (Bt, 2k*C)
        # apply lambdas / init_v here so pass 2 is pure multiply-add-max.
        idx = lax.broadcasted_iota(jnp.int32, t.shape, 1)
        lam = jnp.where(idx < k * C, 1.0, 0.5)
        init = jnp.where(idx < C, 1.0, 0.0)
        coef_ref[...] = t * lam + init


# Pass 2: elementwise apply, tiled over batch and spatial (both parallel).
def _dyrelu_apply_kernel(x_ref, coef_ref, o_ref, *, k):
    C = x_ref.shape[1]
    xf = x_ref[...].astype(jnp.float32)                    # (Bt, C, HWt)
    coef = coef_ref[...]                                   # (Bt, 2k*C)
    out = None
    for j in range(k):
        a = coef[:, j * C:(j + 1) * C][:, :, None]
        c = coef[:, (k + j) * C:(k + j + 1) * C][:, :, None]
        y = xf * a + c
        out = y if out is None else jnp.maximum(out, y)
    o_ref[...] = out.astype(o_ref.dtype)


# --------------------------------------------------------------------------- #
# Wrapper.
# --------------------------------------------------------------------------- #
def dyrelu_b(x, w1, b1, w2, b2, *, k=2, two_pass=None,
             batch_tile=None, hw_tile=None):
    """DyReLUB forward (conv_type='2d').

    x: (B, C, H, W); w1: (C//r, C); b1: (C//r,); w2: (2kC, C//r); b2: (2kC,).
    Returns (B, C, H, W) in x.dtype.
    """
    B, C, H, W = x.shape
    hidden = w1.shape[0]
    assert w2.shape[0] == 2 * k * C and w2.shape[1] == hidden
    HW = H * W
    dtype = x.dtype
    itemsize = x.dtype.itemsize

    vmem_cap = _vmem_capacity_bytes()
    tile_budget = vmem_cap // 2                # budget for streamed x/out tiles
    vmem_limit = int(vmem_cap * 0.9)

    # per-batch-element VMEM cost of a whole-slab step:
    # double-buffered in + out (native dtype) + ~3 f32-sized elementwise temps.
    def slab_bytes(hw_len):
        return C * hw_len * (4 * itemsize + 3 * 4)

    hwp0 = _round_up(HW, LANE)
    if two_pass is None:
        two_pass = slab_bytes(hwp0) > tile_budget

    # ---- parameters, reshaped once host-side --------------------------------
    # fc1 pre-transposed so the kernel does (Bt, C) @ (C, hidden).
    w1t = w1.T.astype(jnp.float32)                              # (C, hidden)
    b1r = b1.reshape(1, hidden).astype(jnp.float32)
    # fc2 output index m = c*2k + j (torch .view(-1, C, 2k)); stack the 2k
    # per-channel heads head-major on lanes -> single (hidden, 2k*C) matmul.
    w2r = w2.reshape(C, 2 * k, hidden).astype(jnp.float32)
    wht = jnp.transpose(w2r, (2, 1, 0)).reshape(hidden, 2 * k * C)
    bh = b2.reshape(C, 2 * k).T.reshape(1, 2 * k * C).astype(jnp.float32)

    # ---- tiling / padding ----------------------------------------------------
    if not two_pass:
        hwt = hwp = hwp0
        bt = batch_tile or max(1, tile_budget // max(slab_bytes(hwp), 1))
    else:
        hwt = _round_up(hw_tile or min(hwp0, 2048), LANE)
        hwp = _round_up(HW, hwt)
        bt = batch_tile or max(1, tile_budget // max(slab_bytes(hwt), 1))
    bt = max(1, min(bt, B))
    b_pad = _round_up(B, bt)

    x2 = x.reshape(B, C, HW)
    padded = (b_pad, hwp) != (B, HW)
    if padded:
        x2 = jnp.pad(x2, ((0, b_pad - B), (0, 0), (0, hwp - HW)))

    nb = b_pad // bt
    nhw = hwp // hwt

    def run(single_buffer):
        param_specs = [
            _const_spec((C, hidden), single_buffer),
            _const_spec((1, hidden), single_buffer),
            _const_spec((hidden, 2 * k * C), single_buffer),
            _const_spec((1, 2 * k * C), single_buffer),
        ]
        if not two_pass:
            return pl.pallas_call(
                functools.partial(_dyrelu_fused_kernel, true_hw=HW, k=k),
                out_shape=jax.ShapeDtypeStruct((b_pad, C, hwp), dtype),
                grid=(nb,),
                in_specs=[pl.BlockSpec((bt, C, hwp), lambda b: (b, 0, 0))]
                + param_specs,
                out_specs=pl.BlockSpec((bt, C, hwp), lambda b: (b, 0, 0)),
                compiler_params=pltpu.CompilerParams(
                    dimension_semantics=("parallel",),
                    vmem_limit_bytes=vmem_limit),
            )(x2, w1t, b1r, wht, bh)

        # pass 1: coefficients, (nb, bt, 2k*C) f32, spatial is a reduction axis.
        coefs = pl.pallas_call(
            functools.partial(_dyrelu_coef_kernel, true_hw=HW, k=k),
            out_shape=jax.ShapeDtypeStruct((nb, bt, 2 * k * C), jnp.float32),
            grid=(nb, nhw),
            in_specs=[pl.BlockSpec((bt, C, hwt), lambda b, s: (b, 0, s))]
            + param_specs,
            out_specs=pl.BlockSpec((None, bt, 2 * k * C), lambda b, s: (b, 0, 0)),
            scratch_shapes=[pltpu.VMEM((bt, C), jnp.float32)],
            compiler_params=pltpu.CompilerParams(
                dimension_semantics=("parallel", "arbitrary"),
                vmem_limit_bytes=vmem_limit),
        )(x2, w1t, b1r, wht, bh)

        # pass 2: elementwise apply, both grid axes parallel (uses both v7x TCs).
        return pl.pallas_call(
            functools.partial(_dyrelu_apply_kernel, k=k),
            out_shape=jax.ShapeDtypeStruct((b_pad, C, hwp), dtype),
            grid=(nb, nhw),
            in_specs=[pl.BlockSpec((bt, C, hwt), lambda b, s: (b, 0, s)),
                      pl.BlockSpec((None, bt, 2 * k * C), lambda b, s: (b, 0, 0))],
            out_specs=pl.BlockSpec((bt, C, hwt), lambda b, s: (b, 0, s)),
            compiler_params=pltpu.CompilerParams(
                dimension_semantics=("parallel", "parallel"),
                vmem_limit_bytes=vmem_limit),
        )(x2, coefs)

    try:
        out = run(single_buffer=True)
    except Exception:
        # Pallas version without pipeline_mode=pl.Buffered support.
        out = run(single_buffer=False)

    if padded:
        out = out[:B, :, :HW]
    return out.reshape(B, C, H, W)


# --------------------------------------------------------------------------- #
# Pure-JAX reference (replica of DyReLUB.forward, conv_type='2d').
# --------------------------------------------------------------------------- #
def reference(x, w1, b1, w2, b2, k=2):
    B, C, H, W = x.shape
    xf = x.astype(jnp.float32)
    lambdas = jnp.array([1.0] * k + [0.5] * k, jnp.float32)
    init_v = jnp.array([1.0] + [0.0] * (2 * k - 1), jnp.float32)
    theta = xf.mean(axis=-1).mean(axis=-1)                 # (B, C)
    theta = jax.nn.relu(theta @ w1.T + b1)
    theta = theta @ w2.T + b2
    theta = 2.0 * jax.nn.sigmoid(theta) - 1.0
    coefs = theta.reshape(B, C, 2 * k) * lambdas + init_v  # (B, C, 2k)
    out = xf[..., None] * coefs[:, :, None, None, :k] + coefs[:, :, None, None, k:]
    return out.max(axis=-1)


if __name__ == "__main__":
    key = jax.random.PRNGKey(0)
    k1, k2, k3, k4, k5, k6 = jax.random.split(key, 6)

    B, C, H, W = 2, 16, 16, 16
    reduction, k = 8, 2
    hidden = C // reduction

    x = jax.random.normal(k1, (B, C, H, W), jnp.float32)
    bound1 = 1.0 / (C ** 0.5)
    w1 = jax.random.uniform(k2, (hidden, C), jnp.float32, -bound1, bound1)
    b1 = jax.random.uniform(k3, (hidden,), jnp.float32, -bound1, bound1)
    bound2 = 1.0 / (hidden ** 0.5)
    w2 = jax.random.uniform(k4, (2 * k * C, hidden), jnp.float32, -bound2, bound2)
    b2 = jax.random.uniform(k5, (2 * k * C,), jnp.float32, -bound2, bound2)

    # ---- case 1: fused single-pass path, f32 I/O -----------------------------
    out = jax.block_until_ready(dyrelu_b(x, w1, b1, w2, b2, k=k))
    ref = reference(x, w1, b1, w2, b2, k=k)
    assert out.shape == (B, C, H, W)
    assert jnp.allclose(out, ref, atol=1e-5, rtol=1e-5), float(
        jnp.max(jnp.abs(out - ref)))

    # ---- case 2: fused path, bf16 streaming I/O (f32 math in-kernel) ---------
    xb = x.astype(jnp.bfloat16)
    out_b = jax.block_until_ready(dyrelu_b(xb, w1, b1, w2, b2, k=k))
    ref_b = reference(xb, w1, b1, w2, b2, k=k)
    assert out_b.dtype == jnp.bfloat16
    assert jnp.allclose(out_b.astype(jnp.float32), ref_b, atol=5e-2, rtol=5e-2), \
        float(jnp.max(jnp.abs(out_b.astype(jnp.float32) - ref_b)))

    # ---- case 3: two-pass path (odd batch, non-128 spatial -> pad + crop) ----
    B3, H3, W3 = 3, 20, 20
    x3 = jax.random.normal(k6, (B3, C, H3, W3), jnp.float32)
    out3 = jax.block_until_ready(
        dyrelu_b(x3, w1, b1, w2, b2, k=k, two_pass=True, batch_tile=2, hw_tile=128))
    ref3 = reference(x3, w1, b1, w2, b2, k=k)
    assert out3.shape == (B3, C, H3, W3)
    assert jnp.allclose(out3, ref3, atol=1e-5, rtol=1e-5), float(
        jnp.max(jnp.abs(out3 - ref3)))

    print("KERNEL_OK")
</pallas_src>

<mosaic_0001>
module attributes {stable_mosaic.version = 11 : i64} {
  func.func @_dyrelu_fused_kernel(%arg0: i32, %arg1: memref<2x16x256xf32, #tpu.memory_space<vmem>>, %arg2: memref<16x2xf32, #tpu.memory_space<vmem>>, %arg3: memref<1x2xf32, #tpu.memory_space<vmem>>, %arg4: memref<2x64xf32, #tpu.memory_space<vmem>>, %arg5: memref<1x64xf32, #tpu.memory_space<vmem>>, %arg6: memref<2x16x256xf32, #tpu.memory_space<vmem>>) attributes {dimension_semantics = [#tpu.dimension_semantics<parallel>], iteration_bounds = array<i64: 1>, scalar_prefetch = 0 : i64, scratch_operands = 0 : i64, tpu.core_type = #tpu.core_type<tc>, window_params = [{transform_indices = @transform_0, window_bounds = array<i64: 2, 16, 256>}, {pipeline_mode = #tpu.pipeline_mode<synchronous>, transform_indices = @transform_1, window_bounds = array<i64: 16, 2>}, {pipeline_mode = #tpu.pipeline_mode<synchronous>, transform_indices = @transform_2, window_bounds = array<i64: 1, 2>}, {pipeline_mode = #tpu.pipeline_mode<synchronous>, transform_indices = @transform_3, window_bounds = array<i64: 2, 64>}, {pipeline_mode = #tpu.pipeline_mode<synchronous>, transform_indices = @transform_4, window_bounds = array<i64: 1, 64>}, {transform_indices = @transform_5, window_bounds = array<i64: 2, 16, 256>}]} {
    %c0 = arith.constant 0 : index
    %c0_0 = arith.constant 0 : index
    %c0_1 = arith.constant 0 : index
    %0 = vector.load %arg1[%c0, %c0_0, %c0_1] : memref<2x16x256xf32, #tpu.memory_space<vmem>>, vector<2x16x256xf32>
    %cst = arith.constant dense<0.000000e+00> : vector<2x16xf32>
    %1 = vector.multi_reduction <add>, %0, %cst [2] : vector<2x16x256xf32> to vector<2x16xf32>
    %cst_2 = arith.constant 3.906250e-03 : f32
    %2 = vector.broadcast %cst_2 : f32 to vector<2x16xf32>
    %3 = arith.mulf %1, %2 : vector<2x16xf32>
    %c0_3 = arith.constant 0 : index
    %c0_4 = arith.constant 0 : index
    %4 = vector.load %arg2[%c0_3, %c0_4] : memref<16x2xf32, #tpu.memory_space<vmem>>, vector<16x2xf32>
    %cst_5 = arith.constant dense<0.000000e+00> : vector<2x2xf32>
    %5 = tpu.matmul %3, %4, %cst_5 {dimension_numbers = #tpu.dot_dimension_numbers<[1], [0], [0], [1], [0, 0, 1, 1], [], []>} : vector<2x16xf32>, vector<16x2xf32>, vector<2x2xf32> -> vector<2x2xf32>
    %c0_6 = arith.constant 0 : index
    %c0_7 = arith.constant 0 : index
    %6 = vector.load %arg3[%c0_6, %c0_7] : memref<1x2xf32, #tpu.memory_space<vmem>>, vector<1x2xf32>
    %7 = vector.broadcast %6 : vector<1x2xf32> to vector<2x2xf32>
    %8 = arith.addf %5, %7 : vector<2x2xf32>
    %cst_8 = arith.constant 0.000000e+00 : f32
    %9 = vector.broadcast %cst_8 : f32 to vector<2x2xf32>
    %10 = arith.maximumf %8, %9 : vector<2x2xf32>
    %c0_9 = arith.constant 0 : index
    %c0_10 = arith.constant 0 : index
    %11 = vector.load %arg4[%c0_9, %c0_10] : memref<2x64xf32, #tpu.memory_space<vmem>>, vector<2x64xf32>
    %cst_11 = arith.constant dense<0.000000e+00> : vector<2x64xf32>
    %12 = tpu.matmul %10, %11, %cst_11 {dimension_numbers = #tpu.dot_dimension_numbers<[1], [0], [0], [1], [0, 0, 1, 1], [], []>} : vector<2x2xf32>, vector<2x64xf32>, vector<2x64xf32> -> vector<2x64xf32>
    %c0_12 = arith.constant 0 : index
    %c0_13 = arith.constant 0 : index
    %13 = vector.load %arg5[%c0_12, %c0_13] : memref<1x64xf32, #tpu.memory_space<vmem>>, vector<1x64xf32>
    %14 = vector.broadcast %13 : vector<1x64xf32> to vector<2x64xf32>
    %15 = arith.addf %12, %14 : vector<2x64xf32>
    %16 = arith.negf %15 : vector<2x64xf32>
    %17 = math.exp %16 : vector<2x64xf32>
    %cst_14 = arith.constant 1.000000e+00 : f32
    %18 = vector.broadcast %cst_14 : f32 to vector<2x64xf32>
    %19 = arith.addf %18, %17 : vector<2x64xf32>
    %20 = arith.divf %18, %19 : vector<2x64xf32>
    %cst_15 = arith.constant 2.000000e+00 : f32
    %21 = vector.broadcast %cst_15 : f32 to vector<2x64xf32>
    %22 = arith.mulf %21, %20 : vector<2x64xf32>
    %cst_16 = arith.constant 1.000000e+00 : f32
    %23 = vector.broadcast %cst_16 : f32 to vector<2x64xf32>
    %24 = arith.subf %22, %23 : vector<2x64xf32>
    %25 = vector.extract_strided_slice %24 {offsets = [0, 0], sizes = [2, 16], strides = [1, 1]} : vector<2x64xf32> to vector<2x16xf32>
    %cst_17 = arith.constant 1.000000e+00 : f32
    %26 = vector.broadcast %cst_17 : f32 to vector<2x16xf32>
    %27 = arith.addf %25, %26 : vector<2x16xf32>
    %28 = vector.shape_cast %27 : vector<2x16xf32> to vector<2x16x1xf32>
    %29 = vector.extract_strided_slice %24 {offsets = [0, 32], sizes = [2, 16], strides = [1, 1]} : vector<2x64xf32> to vector<2x16xf32>
    %cst_18 = arith.constant 5.000000e-01 : f32
    %30 = vector.broadcast %cst_18 : f32 to vector<2x16xf32>
    %31 = arith.mulf %29, %30 : vector<2x16xf32>
    %32 = vector.shape_cast %31 : vector<2x16xf32> to vector<2x16x1xf32>
    %33 = vector.broadcast %28 : vector<2x16x1xf32> to vector<2x16x256xf32>
    %34 = arith.mulf %0, %33 : vector<2x16x256xf32>
    %35 = vector.broadcast %32 : vector<2x16x1xf32> to vector<2x16x256xf32>
    %36 = arith.addf %34, %35 : vector<2x16x256xf32>
    %37 = vector.extract_strided_slice %24 {offsets = [0, 16], sizes = [2, 16], strides = [1, 1]} : vector<2x64xf32> to vector<2x16xf32>
    %cst_19 = arith.constant 0.000000e+00 : f32
    %38 = vector.broadcast %cst_19 : f32 to vector<2x16xf32>
    %39 = arith.addf %37, %38 : vector<2x16xf32>
    %40 = vector.shape_cast %39 : vector<2x16xf32> to vector<2x16x1xf32>
    %41 = vector.extract_strided_slice %24 {offsets = [0, 48], sizes = [2, 16], strides = [1, 1]} : vector<2x64xf32> to vector<2x16xf32>
    %cst_20 = arith.constant 5.000000e-01 : f32
    %42 = vector.broadcast %cst_20 : f32 to vector<2x16xf32>
    %43 = arith.mulf %41, %42 : vector<2x16xf32>
    %44 = vector.shape_cast %43 : vector<2x16xf32> to vector<2x16x1xf32>
    %45 = vector.broadcast %40 : vector<2x16x1xf32> to vector<2x16x256xf32>
    %46 = arith.mulf %0, %45 : vector<2x16x256xf32>
    %47 = vector.broadcast %44 : vector<2x16x1xf32> to vector<2x16x256xf32>
    %48 = arith.addf %46, %47 : vector<2x16x256xf32>
    %49 = arith.maximumf %36, %48 : vector<2x16x256xf32>
    %c0_21 = arith.constant 0 : index
    %c0_22 = arith.constant 0 : index
    %c0_23 = arith.constant 0 : index
    %50 = vector.load %arg6[%c0_21, %c0_22, %c0_23] : memref<2x16x256xf32, #tpu.memory_space<vmem>>, vector<2x16x256xf32>
    tpu.vector_store %arg6[%c0_21, %c0_22, %c0_23], %49 {strides = array<i32>} : memref<2x16x256xf32, #tpu.memory_space<vmem>>, vector<2x16x256xf32>,
    return
  }
  func.func @transform_0(%arg0: i32) -> (i32, i32, i32) {
    %c0_i32 = arith.constant 0 : i32
    %c0_i32_0 = arith.constant 0 : i32
    %c0_i32_1 = arith.constant 0 : i32
    return %arg0, %c0_i32, %c0_i32_0 : i32, i32, i32
  }
  func.func @transform_1(%arg0: i32) -> (i32, i32) {
    %c0_i32 = arith.constant 0 : i32
    %c0_i32_0 = arith.constant 0 : i32
    %c0_i32_1 = arith.constant 0 : i32
    return %c0_i32, %c0_i32_0 : i32, i32
  }
  func.func @transform_2(%arg0: i32) -> (i32, i32) {
    %c0_i32 = arith.constant 0 : i32
    %c0_i32_0 = arith.constant 0 : i32
    %c0_i32_1 = arith.constant 0 : i32
    return %c0_i32, %c0_i32_0 : i32, i32
  }
  func.func @transform_3(%arg0: i32) -> (i32, i32) {
    %c0_i32 = arith.constant 0 : i32
    %c0_i32_0 = arith.constant 0 : i32
    %c0_i32_1 = arith.constant 0 : i32
    return %c0_i32, %c0_i32_0 : i32, i32
  }
  func.func @transform_4(%arg0: i32) -> (i32, i32) {
    %c0_i32 = arith.constant 0 : i32
    %c0_i32_0 = arith.constant 0 : i32
    %c0_i32_1 = arith.constant 0 : i32
    return %c0_i32, %c0_i32_0 : i32, i32
  }
  func.func @transform_5(%arg0: i32) -> (i32, i32, i32) {
    %c0_i32 = arith.constant 0 : i32
    %c0_i32_0 = arith.constant 0 : i32
    %c0_i32_1 = arith.constant 0 : i32
    return %arg0, %c0_i32, %c0_i32_0 : i32, i32, i32
  }
}

module attributes {stable_mosaic.version = 11 : i64} {
  func.func @_dyrelu_fused_kernel(%arg0: i32, %arg1: memref<2x16x256xf32, #tpu.memory_space<vmem>>, %arg2: memref<16x2xf32, #tpu.memory_space<vmem>>, %arg3: memref<1x2xf32, #tpu.memory_space<vmem>>, %arg4: memref<2x64xf32, #tpu.memory_space<vmem>>, %arg5: memref<1x64xf32, #tpu.memory_space<vmem>>, %arg6: memref<2x16x256xf32, #tpu.memory_space<vmem>>) attributes {dimension_semantics = [#tpu.dimension_semantics<parallel>], iteration_bounds = array<i64: 1>, scalar_prefetch = 0 : i64, scratch_operands = 0 : i64, tpu.core_type = #tpu.core_type<tc>, window_params = [{transform_indices = @transform_0, window_bounds = array<i64: 2, 16, 256>}, {pipeline_mode = #tpu.pipeline_mode<synchronous>, transform_indices = @transform_1, window_bounds = array<i64: 16, 2>}, {pipeline_mode = #tpu.pipeline_mode<synchronous>, transform_indices = @transform_2, window_bounds = array<i64: 1, 2>}, {pipeline_mode = #tpu.pipeline_mode<synchronous>, transform_indices = @transform_3, window_bounds = array<i64: 2, 64>}, {pipeline_mode = #tpu.pipeline_mode<synchronous>, transform_indices = @transform_4, window_bounds = array<i64: 1, 64>}, {transform_indices = @transform_5, window_bounds = array<i64: 2, 16, 256>}]} {
    %c0 = arith.constant 0 : index
    %c0_0 = arith.constant 0 : index
    %c0_1 = arith.constant 0 : index
    %0 = vector.load %arg1[%c0, %c0_0, %c0_1] : memref<2x16x256xf32, #tpu.memory_space<vmem>>, vector<2x16x256xf32>
    %cst = arith.constant dense<0.000000e+00> : vector<2x16xf32>
    %1 = vector.multi_reduction <add>, %0, %cst [2] : vector<2x16x256xf32> to vector<2x16xf32>
    %cst_2 = arith.constant 3.906250e-03 : f32
    %2 = vector.broadcast %cst_2 : f32 to vector<2x16xf32>
    %3 = arith.mulf %1, %2 : vector<2x16xf32>
    %c0_3 = arith.constant 0 : index
    %c0_4 = arith.constant 0 : index
    %4 = vector.load %arg2[%c0_3, %c0_4] : memref<16x2xf32, #tpu.memory_space<vmem>>, vector<16x2xf32>
    %cst_5 = arith.constant dense<0.000000e+00> : vector<2x2xf32>
    %5 = tpu.matmul %3, %4, %cst_5 {dimension_numbers = #tpu.dot_dimension_numbers<[1], [0], [0], [1], [0, 0, 1, 1], [], []>} : vector<2x16xf32>, vector<16x2xf32>, vector<2x2xf32> -> vector<2x2xf32>
    %c0_6 = arith.constant 0 : index
    %c0_7 = arith.constant 0 : index
    %6 = vector.load %arg3[%c0_6, %c0_7] : memref<1x2xf32, #tpu.memory_space<vmem>>, vector<1x2xf32>
    %7 = vector.broadcast %6 : vector<1x2xf32> to vector<2x2xf32>
    %8 = arith.addf %5, %7 : vector<2x2xf32>
    %cst_8 = arith.constant 0.000000e+00 : f32
    %9 = vector.broadcast %cst_8 : f32 to vector<2x2xf32>
    %10 = arith.maximumf %8, %9 : vector<2x2xf32>
    %c0_9 = arith.constant 0 : index
    %c0_10 = arith.constant 0 : index
    %11 = vector.load %arg4[%c0_9, %c0_10] : memref<2x64xf32, #tpu.memory_space<vmem>>, vector<2x64xf32>
    %cst_11 = arith.constant dense<0.000000e+00> : vector<2x64xf32>
    %12 = tpu.matmul %10, %11, %cst_11 {dimension_numbers = #tpu.dot_dimension_numbers<[1], [0], [0], [1], [0, 0, 1, 1], [], []>} : vector<2x2xf32>, vector<2x64xf32>, vector<2x64xf32> -> vector<2x64xf32>
    %c0_12 = arith.constant 0 : index
    %c0_13 = arith.constant 0 : index
    %13 = vector.load %arg5[%c0_12, %c0_13] : memref<1x64xf32, #tpu.memory_space<vmem>>, vector<1x64xf32>
    %14 = vector.broadcast %13 : vector<1x64xf32> to vector<2x64xf32>
    %15 = arith.addf %12, %14 : vector<2x64xf32>
    %16 = arith.negf %15 : vector<2x64xf32>
    %17 = math.exp %16 : vector<2x64xf32>
    %cst_14 = arith.constant 1.000000e+00 : f32
    %18 = vector.broadcast %cst_14 : f32 to vector<2x64xf32>
    %19 = arith.addf %18, %17 : vector<2x64xf32>
    %20 = arith.divf %18, %19 : vector<2x64xf32>
    %cst_15 = arith.constant 2.000000e+00 : f32
    %21 = vector.broadcast %cst_15 : f32 to vector<2x64xf32>
    %22 = arith.mulf %21, %20 : vector<2x64xf32>
    %cst_16 = arith.constant 1.000000e+00 : f32
    %23 = vector.broadcast %cst_16 : f32 to vector<2x64xf32>
    %24 = arith.subf %22, %23 : vector<2x64xf32>
    %25 = vector.extract_strided_slice %24 {offsets = [0, 0], sizes = [2, 16], strides = [1, 1]} : vector<2x64xf32> to vector<2x16xf32>
    %cst_17 = arith.constant 1.000000e+00 : f32
    %26 = vector.broadcast %cst_17 : f32 to vector<2x16xf32>
    %27 = arith.addf %25, %26 : vector<2x16xf32>
    %28 = vector.shape_cast %27 : vector<2x16xf32> to vector<2x16x1xf32>
    %29 = vector.extract_strided_slice %24 {offsets = [0, 32], sizes = [2, 16], strides = [1, 1]} : vector<2x64xf32> to vector<2x16xf32>
    %cst_18 = arith.constant 5.000000e-01 : f32
    %30 = vector.broadcast %cst_18 : f32 to vector<2x16xf32>
    %31 = arith.mulf %29, %30 : vector<2x16xf32>
    %32 = vector.shape_cast %31 : vector<2x16xf32> to vector<2x16x1xf32>
    %33 = vector.broadcast %28 : vector<2x16x1xf32> to vector<2x16x256xf32>
    %34 = arith.mulf %0, %33 : vector<2x16x256xf32>
    %35 = vector.broadcast %32 : vector<2x16x1xf32> to vector<2x16x256xf32>
    %36 = arith.addf %34, %35 : vector<2x16x256xf32>
    %37 = vector.extract_strided_slice %24 {offsets = [0, 16], sizes = [2, 16], strides = [1, 1]} : vector<2x64xf32> to vector<2x16xf32>
    %cst_19 = arith.constant 0.000000e+00 : f32
    %38 = vector.broadcast %cst_19 : f32 to vector<2x16xf32>
    %39 = arith.addf %37, %38 : vector<2x16xf32>
    %40 = vector.shape_cast %39 : vector<2x16xf32> to vector<2x16x1xf32>
    %41 = vector.extract_strided_slice %24 {offsets = [0, 48], sizes = [2, 16], strides = [1, 1]} : vector<2x64xf32> to vector<2x16xf32>
    %cst_20 = arith.constant 5.000000e-01 : f32
    %42 = vector.broadcast %cst_20 : f32 to vector<2x16xf32>
    %43 = arith.mulf %41, %42 : vector<2x16xf32>
    %44 = vector.shape_cast %43 : vector<2x16xf32> to vector<2x16x1xf32>
    %45 = vector.broadcast %40 : vector<2x16x1xf32> to vector<2x16x256xf32>
    %46 = arith.mulf %0, %45 : vector<2x16x256xf32>
    %47 = vector.broadcast %44 : vector<2x16x1xf32> to vector<2x16x256xf32>
    %48 = arith.addf %46, %47 : vector<2x16x256xf32>
    %49 = arith.maximumf %36, %48 : vector<2x16x256xf32>
    %c0_21 = arith.constant 0 : index
    %c0_22 = arith.constant 0 : index
    %c0_23 = arith.constant 0 : index
    %50 = vector.load %arg6[%c0_21, %c0_22, %c0_23] : memref<2x16x256xf32, #tpu.memory_space<vmem>>, vector<2x16x256xf32>
    tpu.vector_store %arg6[%c0_21, %c0_22, %c0_23], %49 {strides = array<i32>} : memref<2x16x256xf32, #tpu.memory_space<vmem>>, vector<2x16x256xf32>,
    return
  }
  func.func @transform_0(%arg0: i32) -> (i32, i32, i32) {
    %c0_i32 = arith.constant 0 : i32
    %c0_i32_0 = arith.constant 0 : i32
    %c0_i32_1 = arith.constant 0 : i32
    return %arg0, %c0_i32, %c0_i32_0 : i32, i32, i32
  }
  func.func @transform_1(%arg0: i32) -> (i32, i32) {
    %c0_i32 = arith.constant 0 : i32
    %c0_i32_0 = arith.constant 0 : i32
    %c0_i32_1 = arith.constant 0 : i32
    return %c0_i32, %c0_i32_0 : i32, i32
  }
  func.func @transform_2(%arg0: i32) -> (i32, i32) {
    %c0_i32 = arith.constant 0 : i32
    %c0_i32_0 = arith.constant 0 : i32
    %c0_i32_1 = arith.constant 0 : i32
    return %c0_i32, %c0_i32_0 : i32, i32
  }
  func.func @transform_3(%arg0: i32) -> (i32, i32) {
    %c0_i32 = arith.constant 0 : i32
    %c0_i32_0 = arith.constant 0 : i32
    %c0_i32_1 = arith.constant 0 : i32
    return %c0_i32, %c0_i32_0 : i32, i32
  }
  func.func @transform_4(%arg0: i32) -> (i32, i32) {
    %c0_i32 = arith.constant 0 : i32
    %c0_i32_0 = arith.constant 0 : i32
    %c0_i32_1 = arith.constant 0 : i32
    return %c0_i32, %c0_i32_0 : i32, i32
  }
  func.func @transform_5(%arg0: i32) -> (i32, i32, i32) {
    %c0_i32 = arith.constant 0 : i32
    %c0_i32_0 = arith.constant 0 : i32
    %c0_i32_1 = arith.constant 0 : i32
    return %arg0, %c0_i32, %c0_i32_0 : i32, i32, i32
  }
}

</mosaic_0001>

<bundles_post_ra>
// kernel: tpu_custom_call.1
= control target key start
LH: loop header
LB: loop body
LE: loop exit
PB: predicated region body
PF: predicated region fallthrough
CT: control target
= control target key end

     0   :  { %10 = vsyncpa [#allocation3], 0  ;;  %s599_s0 = inlined_call_operand.hbm [shape: f32[2,16,256], index: 0, kind: input, shape index: {}]   ;;  %s600_s1 = inlined_call_operand.vmem [shape: f32[16,2], index: 1, kind: input, shape index: {}]   ;;  %s601_s2 = inlined_call_operand.vmem [shape: f32[1,2], index: 2, kind: input, shape index: {}]   ;;  %s602_s3 = inlined_call_operand.vmem [shape: f32[2,64], index: 3, kind: input, shape index: {}]   ;;  %s603_s4 = inlined_call_operand.vmem [shape: f32[1,64], index: 4, kind: input, shape index: {}]   ;;  %s604_s5 = inlined_call_operand.hbm [shape: f32[2,16,256], index: 5, kind: output, shape index: {}]  }
   0x1   :  { %11 = vsyncpa [#allocation4], 0  ;;  %s496_s18 = smov [#allocation2]  }
   0x2   :  { %s17_s19 = sshll.u32 %s496_s18, 4  ;;  %s18_s19 = int_to_ptr.vmem [resolvable:$true] %s17_s19 }
   0x3   :  { %s460_s20 = scalar_lea.vmem %s18_s19, 1024  ;;  %p465_p1 = scmp.lt.s32.totalorder %s18_s19, %s18_s19 }
   0x4   :  { %p461_p0 = scmp.ne.s32.totalorder %s18_s19, %s460_s20  ;;  %p466_p2 = scmp.lt.s32.totalorder %s460_s20, %s460_s20 }
   0x6   :  { %p467_p3 = por %p466_p2, %p465_p1 }
   0x8   :  { %p468_p4 = pnand %p467_p3, %p461_p0 }
   0xa   :  { %471 = shalt.err (!%p468_p4)
}
   0xb   :  { %s497_s21 = smov 256   ;;  %s498_s22 = smov 16  }
   0xc   :  { %23 = dma.hbm_to_vmem [thread:$0]  %s599_s0, 1024, %s18_s19, [#allocation3], %s497_s21, %s497_s21, %s498_s22  }
   0xd   :  { %492 = dma.done.wait [#allocation3], 1024  }
   0xe   :  { %493 = vsyncadd [#allocation3], 4294966272  ;;  %v538_v0 = vld [vmem:[#allocation2 + $0x20] sm:$0xff]  ;;  %v540_v1 = vld [vmem:[#allocation2 + $0x28] sm:$0xff]  ;;  %v499_v12 = vmov 0.0   ;;  %vm500_vm0 = vmmov 0   ;;  %v72_v15 = vlaneseq }
   0xf   :  { %v542_v2 = vld [vmem:[#allocation2] sm:$0xff]  ;;  %v49_v3 = vadd.f32 %v540_v1, %v538_v0  ;;  %v546_v4 = vld [vmem:[#allocation2 + $0x8] sm:$0xff]  ;;  %v548_v5 = vld [vmem:[#allocation2 + $0x30] sm:$0xff]  ;;  %430 = vmatprep.subr.mxu0 %v499_v12  ;;  %437 = vmatprep.subr.mxu1 %v499_v12  ;;  %vm83_vm1 = vcmask 130112   ;;  %vm94_vm2 = vcmask 1041409   ;;  %vm96_vm3 = vcmask 130048  }
  0x10   :  { %v550_v6 = vld [vmem:[#allocation2 + $0x38] sm:$0xff]  ;;  %v43_v7 = vadd.f32 %v546_v4, %v542_v2  ;;  %v554_v8 = vld [vmem:[#allocation2 + $0x10] sm:$0xff]  ;;  %v60_v13 = vld [vmem:[%s600_s1 + $0x8] sm:$0xff]  ;;  %434 = vmatprep.mubr.msk.f32.mxu0 %vm500_vm0, %v499_v12  ;;  %439 = vmatprep.mubr.msk.f32.mxu1 %vm500_vm0, %v499_v12  ;;  %v73_v16 = vand.u32 127, %v72_v15  ;;  %v75_v17 = vshrl.u32 %v72_v15, 7  ;;  %vm182_vm4 = vcmask 1041408  }
  0x11   :  { %v556_v9 = vld [vmem:[#allocation2 + $0x18] sm:$0xff]  ;;  %50 = vadd.xlane.f32.xlu1 %v49_v3  ;;  %v52_v10 = vadd.f32 %v550_v6, %v548_v5  ;;  %v59_v14 = vld [vmem:[%s600_s1] sm:$0xff]  ;;  %431 = vmatpush3.msra.mxu0 %v60_v13  ;;  %vm178_vm5 = vcmask 15360  }
  0x12   :  { %44 = vadd.xlane.f32.xlu0 %v43_v7  ;;  %v46_v11 = vadd.f32 %v556_v9, %v554_v8  ;;  %432 = vmatprep.subr.mxu0 %v499_v12  ;;  %v78_v18 = vadd.s32 4294967288, %v73_v16  ;;  %v76_v21 = vsub.s32 %v73_v16, %v75_v17  ;;  %v170_v36 = vld [vmem:[%s602_s3] sm:$0x3]  ;;  %v267_v51 = vsub.s32 0, %v75_v17 }
  0x13   :  { %433 = vmatpush3.msra.mxu0 %v59_v14  ;;  %438 = vmatpush3.msk.msra.mxu1 %vm182_vm4, %v170_v36  ;;  %v418_v37 = vld [vmem:[%s601_s2] ss:$0 sm:$0xff]  ;;  %v278_v54 = vsub.s32 1, %v75_v17  ;;  %s501_s2 = smov [#allocation5]  }
  0x14   :  { %v81_v23 = vsub.s32 %v78_v18, %v75_v17  ;;  %v420_v42 = vld [vmem:[%s603_s4] ss:$0 sm:$0xff]  ;;  %s406_s3 = sshll.u32 %s501_s2, 4  ;;  %s407_s3 = int_to_ptr.vmem [resolvable:$true] %s406_s3 }
  0x15   :  { %53 = vadd.xlane.f32.xlu1 %v52_v10  ;;  %s472_s4 = scalar_lea.vmem %s407_s3, 1024  ;;  %p477_p6 = scmp.lt.s32.totalorder %s407_s3, %s407_s3 }
  0x16   :  { %47 = vadd.xlane.f32.xlu0 %v46_v11  ;;  %p473_p5 = scmp.ne.s32.totalorder %s407_s3, %s472_s4  ;;  %p478_p7 = scmp.lt.s32.totalorder %s472_s4, %s472_s4 }
  0x18   :  { %p479_p8 = por %p478_p7, %p477_p6 }
  0x1a   :  { %p480_p9 = pnand %p479_p8, %p473_p5 }
  0x9a   :  { %v51_v19 = vpop.xlane.xlu1 %50 }
  0x9b   :  { %v45_v20 = vpop.xlane.xlu0 %44  ;;  %v57_v22 = vmul.f32 0.00390625, %v51_v19 }
  0x9c   :  { %v55_v24 = vmul.f32 0.00390625, %v45_v20 }
  0x9d   :  { %v88_v29 = vrot.slane %v57_v22, %v76_v21 }
  0x9e   :  { %v54_v25 = vpop.xlane.xlu1 %53  ;;  %v77_v31 = vrot.slane %v55_v24, %v76_v21 }
  0x9f   :  { %v58_v26 = vmul.f32 0.00390625, %v54_v25  ;;  %v48_v27 = vpop.xlane.xlu0 %47 }
  0xa0   :  { %v56_v28 = vmul.f32 0.00390625, %v48_v27 }
  0xa1   :  { %v92_v30 = vrot.slane %v58_v26, %v81_v23 }
  0xa2   :  { %v82_v32 = vrot.slane %v56_v28, %v81_v23 }
  0xa3   :  { %v93_v33 = vsel %vm83_vm1, %v92_v30, %v88_v29 }
  0xa4   :  { %v84_v34 = vsel %vm83_vm1, %v82_v32, %v77_v31 }
  0xa5   :  { %v95_v35 = vsel %vm94_vm2, %v93_v33, %v84_v34 }
  0xa6   :  { %435 = vmatmul.mubr.msk.f32.vlgmr.msra.gmra.mxu0 %vm96_vm3, %v95_v35 }
 0x166   :  { %v165_v38 = vpop.f32.mrf.mxu0 }
 0x167   :  { %v166_v39 = vadd.f32 %v418_v37, %v165_v38 }
 0x168   :  { %v436_v40 = vpop.f32.mrf.mxu0 }
 0x169   :  { %v169_v41 = vmax.f32 %v166_v39, 0.0 }
 0x16b   :  { %440 = vmatmul.mubr.msk.f32.vlgmr.msra.gmra.mxu1 %vm178_vm5, %v169_v41 }
 0x22b   :  { %v252_v43 = vpop.f32.mrf.mxu1 }
 0x22c   :  { %v253_v44 = vadd.f32 %v420_v42, %v252_v43 }
 0x22d   :  { %v441_v45 = vpop.f32.mrf.mxu1 }
 0x22e   :  { %v423_v46 = vmul.f32 -1.442695, %v253_v44 }
 0x230   :  { %448 = vpow2.f32 %v423_v46 }
 0x23d   :  { %v449_v47 = vpop.eup %448 }
 0x23e   :  { %v259_v48 = vadd.f32 1.0, %v449_v47 }
 0x240   :  { %450 = vrcp.f32 %v259_v48 }
 0x24d   :  { %v451_v49 = vpop.eup %450 }
 0x24e   :  { %v262_v50 = vmul.f32 2.0, %v451_v49 }
 0x250   :  { %v424_v52 = vadd.f32 -1.0, %v262_v50 }
 0x252   :  { %v332_v53 = vrot.slane %v424_v52, %v267_v51  ;;  %v344_v55 = vrot.slane %v424_v52, %v278_v54  ;;  %v264_v56 = vadd.f32 1.0, %v424_v52  ;;  %v287_v58 = vmul.f32 0.5, %v424_v52 }
 0x254   :  { %339 = vbcast.lane.b32.xlu1 %v332_v53, 280  ;;  %335 = vbcast.lane.b32.xlu0 %v332_v53, 272  ;;  %v268_v57 = vrot.slane %v264_v56, %v267_v51  ;;  %v279_v59 = vrot.slane %v264_v56, %v278_v54  ;;  %v291_v60 = vrot.slane %v287_v58, %v267_v51 }
 0x255   :  { %v303_v61 = vrot.slane %v287_v58, %v278_v54 }
 0x258   :  { %351 = vbcast.lane.b32.xlu1 %v344_v55, 280  ;;  %347 = vbcast.lane.b32.xlu0 %v344_v55, 272 }
 0x25c   :  { %274 = vbcast.lane.b32.xlu1 %v268_v57, 264  ;;  %270 = vbcast.lane.b32.xlu0 %v268_v57, 256 }
 0x260   :  { %281 = vbcast.lane.b32.xlu1 %v279_v59, 256  ;;  %294 = vbcast.lane.b32.xlu0 %v291_v60, 288 }
 0x264   :  { %285 = vbcast.lane.b32.xlu1 %v279_v59, 264  ;;  %306 = vbcast.lane.b32.xlu0 %v303_v61, 288 }
 0x268   :  { %298 = vbcast.lane.b32.xlu1 %v291_v60, 296  ;;  %355 = vbcast.lane.b32.xlu0 %v291_v60, 304 }
 0x26c   :  { %310 = vbcast.lane.b32.xlu1 %v303_v61, 296  ;;  %363 = vbcast.lane.b32.xlu0 %v303_v61, 304 }
 0x270   :  { %359 = vbcast.lane.b32.xlu1 %v291_v60, 312 }
 0x274   :  { %367 = vbcast.lane.b32.xlu1 %v303_v61, 312 }
 0x2c6   :  { %v340_v62 = vpop.permute.xlu1 %339  ;;  %v336_v63 = vpop.permute.xlu0 %335 }
 0x2c7   :  { %v369_v16 = vmul.f32 %v336_v63, %v542_v2  ;;  %v370_v17 = vmul.f32 %v336_v63, %v546_v4  ;;  %v371_v36 = vmul.f32 %v340_v62, %v554_v8  ;;  %v372_v37 = vmul.f32 %v340_v62, %v556_v9 }
 0x2ca   :  { %v352_v3 = vpop.permute.xlu1 %351  ;;  %v348_v7 = vpop.permute.xlu0 %347 }
 0x2cb   :  { %v373_v26 = vmul.f32 %v348_v7, %v538_v0  ;;  %v374_v27 = vmul.f32 %v348_v7, %v540_v1  ;;  %v375_v45 = vmul.f32 %v352_v3, %v548_v5  ;;  %v376_v46 = vmul.f32 %v352_v3, %v550_v6 }
 0x2ce   :  { %v275_v10 = vpop.permute.xlu1 %274  ;;  %v271_v11 = vpop.permute.xlu0 %270 }
 0x2cf   :  { %v312_v18 = vmul.f32 %v271_v11, %v542_v2  ;;  %v313_v19 = vmul.f32 %v271_v11, %v546_v4  ;;  %v314_v38 = vmul.f32 %v275_v10, %v554_v8 }
 0x2d2   :  { %v282_v12 = vpop.permute.xlu1 %281  ;;  %v295_v13 = vpop.permute.xlu0 %294 }
 0x2d3   :  { %v320_v22 = vadd.f32 %v312_v18, %v295_v13  ;;  %v321_v23 = vadd.f32 %v313_v19, %v295_v13  ;;  %v316_v28 = vmul.f32 %v282_v12, %v538_v0  ;;  %v317_v29 = vmul.f32 %v282_v12, %v540_v1 }
 0x2d4   :  { %v315_v0 = vmul.f32 %v275_v10, %v556_v9 }
 0x2d6   :  { %v286_v14 = vpop.permute.xlu1 %285  ;;  %v307_v15 = vpop.permute.xlu0 %306 }
 0x2d7   :  { %v324_v33 = vadd.f32 %v316_v28, %v307_v15  ;;  %v325_v4 = vadd.f32 %v317_v29, %v307_v15  ;;  %v318_v47 = vmul.f32 %v286_v14, %v548_v5  ;;  %v319_v48 = vmul.f32 %v286_v14, %v550_v6 }
 0x2da   :  { %v299_v20 = vpop.permute.xlu1 %298  ;;  %v356_v21 = vpop.permute.xlu0 %355 }
 0x2db   :  { %v377_v24 = vadd.f32 %v369_v16, %v356_v21  ;;  %v378_v25 = vadd.f32 %v370_v17, %v356_v21  ;;  %v322_v41 = vadd.f32 %v314_v38, %v299_v20  ;;  %v323_v42 = vadd.f32 %v315_v0, %v299_v20 }
 0x2dd   :  { %v385_v30 = vmax.f32 %v320_v22, %v377_v24  ;;  %v386_v31 = vmax.f32 %v321_v23, %v378_v25 }
 0x2de   :  { %v311_v32 = vpop.permute.xlu1 %310  ;;  %v364_v2 = vpop.permute.xlu0 %363 }
 0x2df   :  { %393 = vst [vmem:[#allocation5] sm:$0xff] %v385_v30  ;;  %394 = vst [vmem:[#allocation5 + $0x8] sm:$0xff] %v386_v31  ;;  %v381_v34 = vadd.f32 %v373_v26, %v364_v2  ;;  %v382_v35 = vadd.f32 %v374_v27, %v364_v2  ;;  %v326_v50 = vadd.f32 %v318_v47, %v311_v32 }
 0x2e0   :  { %v327_v51 = vadd.f32 %v319_v48, %v311_v32 }
 0x2e1   :  { %v389_v39 = vmax.f32 %v324_v33, %v381_v34  ;;  %v390_v1 = vmax.f32 %v325_v4, %v382_v35 }
 0x2e2   :  { %v360_v40 = vpop.permute.xlu1 %359 }
 0x2e3   :  { %397 = vst [vmem:[#allocation5 + $0x20] sm:$0xff] %v389_v39  ;;  %398 = vst [vmem:[#allocation5 + $0x28] sm:$0xff] %v390_v1  ;;  %v379_v43 = vadd.f32 %v371_v36, %v360_v40  ;;  %v380_v44 = vadd.f32 %v372_v37, %v360_v40 }
 0x2e5   :  { %v387_v8 = vmax.f32 %v322_v41, %v379_v43  ;;  %v388_v49 = vmax.f32 %v323_v42, %v380_v44 }
 0x2e6   :  { %v368_v9 = vpop.permute.xlu1 %367 }
 0x2e7   :  { %395 = vst [vmem:[#allocation5 + $0x10] sm:$0xff] %v387_v8  ;;  %396 = vst [vmem:[#allocation5 + $0x18] sm:$0xff] %v388_v49  ;;  %v383_v52 = vadd.f32 %v375_v45, %v368_v9  ;;  %v384_v53 = vadd.f32 %v376_v46, %v368_v9 }
 0x2e9   :  { %v391_v54 = vmax.f32 %v326_v50, %v383_v52  ;;  %v392_v55 = vmax.f32 %v327_v51, %v384_v53 }
 0x2eb   :  { %399 = vst [vmem:[#allocation5 + $0x30] sm:$0xff] %v391_v54  ;;  %400 = vst [vmem:[#allocation5 + $0x38] sm:$0xff] %v392_v55 }
 0x2ec   :  { %483 = shalt.err (!%p480_p9)
}
 0x2ed   :  { %412 = dma.vmem_to_hbm [thread:$0]  %s407_s3, 1024, %s604_s5, [#allocation4], %s497_s21, %s497_s21, %s498_s22  }
 0x2ee   :  { %494 = dma.done.wait [#allocation4], 1024  }
 0x2ef   :  { %495 = vsyncadd [#allocation4], 4294966272 }
 0x2f0   :  { %416 = vsyncpa [#allocation3], 1 }
 0x2f1   :  { %417 = vsyncpa [#allocation4], 1 }

// kernel: tpu_custom_call.1
= control target key start
LH: loop header
LB: loop body
LE: loop exit
PB: predicated region body
PF: predicated region fallthrough
CT: control target
= control target key end

     0   :  { %10 = vsyncpa [#allocation3], 0  ;;  %s599_s0 = inlined_call_operand.hbm [shape: f32[2,16,256], index: 0, kind: input, shape index: {}]   ;;  %s600_s1 = inlined_call_operand.vmem [shape: f32[16,2], index: 1, kind: input, shape index: {}]   ;;  %s601_s2 = inlined_call_operand.vmem [shape: f32[1,2], index: 2, kind: input, shape index: {}]   ;;  %s602_s3 = inlined_call_operand.vmem [shape: f32[2,64], index: 3, kind: input, shape index: {}]   ;;  %s603_s4 = inlined_call_operand.vmem [shape: f32[1,64], index: 4, kind: input, shape index: {}]   ;;  %s604_s5 = inlined_call_operand.hbm [shape: f32[2,16,256], index: 5, kind: output, shape index: {}]  }
   0x1   :  { %11 = vsyncpa [#allocation4], 0  ;;  %s496_s18 = smov [#allocation2]  }
   0x2   :  { %s17_s19 = sshll.u32 %s496_s18, 4  ;;  %s18_s19 = int_to_ptr.vmem [resolvable:$true] %s17_s19 }
   0x3   :  { %s460_s20 = scalar_lea.vmem %s18_s19, 1024  ;;  %p465_p1 = scmp.lt.s32.totalorder %s18_s19, %s18_s19 }
   0x4   :  { %p461_p0 = scmp.ne.s32.totalorder %s18_s19, %s460_s20  ;;  %p466_p2 = scmp.lt.s32.totalorder %s460_s20, %s460_s20 }
   0x6   :  { %p467_p3 = por %p466_p2, %p465_p1 }
   0x8   :  { %p468_p4 = pnand %p467_p3, %p461_p0 }
   0xa   :  { %471 = shalt.err (!%p468_p4)
}
   0xb   :  { %s497_s21 = smov 256   ;;  %s498_s22 = smov 16  }
   0xc   :  { %23 = dma.hbm_to_vmem [thread:$0]  %s599_s0, 1024, %s18_s19, [#allocation3], %s497_s21, %s497_s21, %s498_s22  }
   0xd   :  { %492 = dma.done.wait [#allocation3], 1024  }
   0xe   :  { %493 = vsyncadd [#allocation3], 4294966272  ;;  %v538_v0 = vld [vmem:[#allocation2 + $0x20] sm:$0xff]  ;;  %v540_v1 = vld [vmem:[#allocation2 + $0x28] sm:$0xff]  ;;  %v499_v12 = vmov 0.0   ;;  %vm500_vm0 = vmmov 0   ;;  %v72_v15 = vlaneseq }
   0xf   :  { %v542_v2 = vld [vmem:[#allocation2] sm:$0xff]  ;;  %v49_v3 = vadd.f32 %v540_v1, %v538_v0  ;;  %v546_v4 = vld [vmem:[#allocation2 + $0x8] sm:$0xff]  ;;  %v548_v5 = vld [vmem:[#allocation2 + $0x30] sm:$0xff]  ;;  %430 = vmatprep.subr.mxu0 %v499_v12  ;;  %437 = vmatprep.subr.mxu1 %v499_v12  ;;  %vm83_vm1 = vcmask 130112   ;;  %vm94_vm2 = vcmask 1041409   ;;  %vm96_vm3 = vcmask 130048  }
  0x10   :  { %v550_v6 = vld [vmem:[#allocation2 + $0x38] sm:$0xff]  ;;  %v43_v7 = vadd.f32 %v546_v4, %v542_v2  ;;  %v554_v8 = vld [vmem:[#allocation2 + $0x10] sm:$0xff]  ;;  %v60_v13 = vld [vmem:[%s600_s1 + $0x8] sm:$0xff]  ;;  %434 = vmatprep.mubr.msk.f32.mxu0 %vm500_vm0, %v499_v12  ;;  %439 = vmatprep.mubr.msk.f32.mxu1 %vm500_vm0, %v499_v12  ;;  %v73_v16 = vand.u32 127, %v72_v15  ;;  %v75_v17 = vshrl.u32 %v72_v15, 7  ;;  %vm182_vm4 = vcmask 1041408  }
  0x11   :  { %v556_v9 = vld [vmem:[#allocation2 + $0x18] sm:$0xff]  ;;  %50 = vadd.xlane.f32.xlu1 %v49_v3  ;;  %v52_v10 = vadd.f32 %v550_v6, %v548_v5  ;;  %v59_v14 = vld [vmem:[%s600_s1] sm:$0xff]  ;;  %431 = vmatpush3.msra.mxu0 %v60_v13  ;;  %vm178_vm5 = vcmask 15360  }
  0x12   :  { %44 = vadd.xlane.f32.xlu0 %v43_v7  ;;  %v46_v11 = vadd.f32 %v556_v9, %v554_v8  ;;  %432 = vmatprep.subr.mxu0 %v499_v12  ;;  %v78_v18 = vadd.s32 4294967288, %v73_v16  ;;  %v76_v21 = vsub.s32 %v73_v16, %v75_v17  ;;  %v170_v36 = vld [vmem:[%s602_s3] sm:$0x3]  ;;  %v267_v51 = vsub.s32 0, %v75_v17 }
  0x13   :  { %433 = vmatpush3.msra.mxu0 %v59_v14  ;;  %438 = vmatpush3.msk.msra.mxu1 %vm182_vm4, %v170_v36  ;;  %v418_v37 = vld [vmem:[%s601_s2] ss:$0 sm:$0xff]  ;;  %v278_v54 = vsub.s32 1, %v75_v17  ;;  %s501_s2 = smov [#allocation5]  }
  0x14   :  { %v81_v23 = vsub.s32 %v78_v18, %v75_v17  ;;  %v420_v42 = vld [vmem:[%s603_s4] ss:$0 sm:$0xff]  ;;  %s406_s3 = sshll.u32 %s501_s2, 4  ;;  %s407_s3 = int_to_ptr.vmem [resolvable:$true] %s406_s3 }
  0x15   :  { %53 = vadd.xlane.f32.xlu1 %v52_v10  ;;  %s472_s4 = scalar_lea.vmem %s407_s3, 1024  ;;  %p477_p6 = scmp.lt.s32.totalorder %s407_s3, %s407_s3 }
  0x16   :  { %47 = vadd.xlane.f32.xlu0 %v46_v11  ;;  %p473_p5 = scmp.ne.s32.totalorder %s407_s3, %s472_s4  ;;  %p478_p7 = scmp.lt.s32.totalorder %s472_s4, %s472_s4 }
  0x18   :  { %p479_p8 = por %p478_p7, %p477_p6 }
  0x1a   :  { %p480_p9 = pnand %p479_p8, %p473_p5 }
  0x9a   :  { %v51_v19 = vpop.xlane.xlu1 %50 }
  0x9b   :  { %v45_v20 = vpop.xlane.xlu0 %44  ;;  %v57_v22 = vmul.f32 0.00390625, %v51_v19 }
  0x9c   :  { %v55_v24 = vmul.f32 0.00390625, %v45_v20 }
  0x9d   :  { %v88_v29 = vrot.slane %v57_v22, %v76_v21 }
  0x9e   :  { %v54_v25 = vpop.xlane.xlu1 %53  ;;  %v77_v31 = vrot.slane %v55_v24, %v76_v21 }
  0x9f   :  { %v58_v26 = vmul.f32 0.00390625, %v54_v25  ;;  %v48_v27 = vpop.xlane.xlu0 %47 }
  0xa0   :  { %v56_v28 = vmul.f32 0.00390625, %v48_v27 }
  0xa1   :  { %v92_v30 = vrot.slane %v58_v26, %v81_v23 }
  0xa2   :  { %v82_v32 = vrot.slane %v56_v28, %v81_v23 }
  0xa3   :  { %v93_v33 = vsel %vm83_vm1, %v92_v30, %v88_v29 }
  0xa4   :  { %v84_v34 = vsel %vm83_vm1, %v82_v32, %v77_v31 }
  0xa5   :  { %v95_v35 = vsel %vm94_vm2, %v93_v33, %v84_v34 }
  0xa6   :  { %435 = vmatmul.mubr.msk.f32.vlgmr.msra.gmra.mxu0 %vm96_vm3, %v95_v35 }
 0x166   :  { %v165_v38 = vpop.f32.mrf.mxu0 }
 0x167   :  { %v166_v39 = vadd.f32 %v418_v37, %v165_v38 }
 0x168   :  { %v436_v40 = vpop.f32.mrf.mxu0 }
 0x169   :  { %v169_v41 = vmax.f32 %v166_v39, 0.0 }
 0x16b   :  { %440 = vmatmul.mubr.msk.f32.vlgmr.msra.gmra.mxu1 %vm178_vm5, %v169_v41 }
 0x22b   :  { %v252_v43 = vpop.f32.mrf.mxu1 }
 0x22c   :  { %v253_v44 = vadd.f32 %v420_v42, %v252_v43 }
 0x22d   :  { %v441_v45 = vpop.f32.mrf.mxu1 }
 0x22e   :  { %v423_v46 = vmul.f32 -1.442695, %v253_v44 }
 0x230   :  { %448 = vpow2.f32 %v423_v46 }
 0x23d   :  { %v449_v47 = vpop.eup %448 }
 0x23e   :  { %v259_v48 = vadd.f32 1.0, %v449_v47 }
 0x240   :  { %450 = vrcp.f32 %v259_v48 }
 0x24d   :  { %v451_v49 = vpop.eup %450 }
 0x24e   :  { %v262_v50 = vmul.f32 2.0, %v451_v49 }
 0x250   :  { %v424_v52 = vadd.f32 -1.0, %v262_v50 }
 0x252   :  { %v332_v53 = vrot.slane %v424_v52, %v267_v51  ;;  %v344_v55 = vrot.slane %v424_v52, %v278_v54  ;;  %v264_v56 = vadd.f32 1.0, %v424_v52  ;;  %v287_v58 = vmul.f32 0.5, %v424_v52 }
 0x254   :  { %339 = vbcast.lane.b32.xlu1 %v332_v53, 280  ;;  %335 = vbcast.lane.b32.xlu0 %v332_v53, 272  ;;  %v268_v57 = vrot.slane %v264_v56, %v267_v51  ;;  %v279_v59 = vrot.slane %v264_v56, %v278_v54  ;;  %v291_v60 = vrot.slane %v287_v58, %v267_v51 }
 0x255   :  { %v303_v61 = vrot.slane %v287_v58, %v278_v54 }
 0x258   :  { %351 = vbcast.lane.b32.xlu1 %v344_v55, 280  ;;  %347 = vbcast.lane.b32.xlu0 %v344_v55, 272 }
 0x25c   :  { %274 = vbcast.lane.b32.xlu1 %v268_v57, 264  ;;  %270 = vbcast.lane.b32.xlu0 %v268_v57, 256 }
 0x260   :  { %281 = vbcast.lane.b32.xlu1 %v279_v59, 256  ;;  %294 = vbcast.lane.b32.xlu0 %v291_v60, 288 }
 0x264   :  { %285 = vbcast.lane.b32.xlu1 %v279_v59, 264  ;;  %306 = vbcast.lane.b32.xlu0 %v303_v61, 288 }
 0x268   :  { %298 = vbcast.lane.b32.xlu1 %v291_v60, 296  ;;  %355 = vbcast.lane.b32.xlu0 %v291_v60, 304 }
 0x26c   :  { %310 = vbcast.lane.b32.xlu1 %v303_v61, 296  ;;  %363 = vbcast.lane.b32.xlu0 %v303_v61, 304 }
 0x270   :  { %359 = vbcast.lane.b32.xlu1 %v291_v60, 312 }
 0x274   :  { %367 = vbcast.lane.b32.xlu1 %v303_v61, 312 }
 0x2c6   :  { %v340_v62 = vpop.permute.xlu1 %339  ;;  %v336_v63 = vpop.permute.xlu0 %335 }
 0x2c7   :  { %v369_v16 = vmul.f32 %v336_v63, %v542_v2  ;;  %v370_v17 = vmul.f32 %v336_v63, %v546_v4  ;;  %v371_v36 = vmul.f32 %v340_v62, %v554_v8  ;;  %v372_v37 = vmul.f32 %v340_v62, %v556_v9 }
 0x2ca   :  { %v352_v3 = vpop.permute.xlu1 %351  ;;  %v348_v7 = vpop.permute.xlu0 %347 }
 0x2cb   :  { %v373_v26 = vmul.f32 %v348_v7, %v538_v0  ;;  %v374_v27 = vmul.f32 %v348_v7, %v540_v1  ;;  %v375_v45 = vmul.f32 %v352_v3, %v548_v5  ;;  %v376_v46 = vmul.f32 %v352_v3, %v550_v6 }
 0x2ce   :  { %v275_v10 = vpop.permute.xlu1 %274  ;;  %v271_v11 = vpop.permute.xlu0 %270 }
 0x2cf   :  { %v312_v18 = vmul.f32 %v271_v11, %v542_v2  ;;  %v313_v19 = vmul.f32 %v271_v11, %v546_v4  ;;  %v314_v38 = vmul.f32 %v275_v10, %v554_v8 }
 0x2d2   :  { %v282_v12 = vpop.permute.xlu1 %281  ;;  %v295_v13 = vpop.permute.xlu0 %294 }
 0x2d3   :  { %v320_v22 = vadd.f32 %v312_v18, %v295_v13  ;;  %v321_v23 = vadd.f32 %v313_v19, %v295_v13  ;;  %v316_v28 = vmul.f32 %v282_v12, %v538_v0  ;;  %v317_v29 = vmul.f32 %v282_v12, %v540_v1 }
 0x2d4   :  { %v315_v0 = vmul.f32 %v275_v10, %v556_v9 }
 0x2d6   :  { %v286_v14 = vpop.permute.xlu1 %285  ;;  %v307_v15 = vpop.permute.xlu0 %306 }
 0x2d7   :  { %v324_v33 = vadd.f32 %v316_v28, %v307_v15  ;;  %v325_v4 = vadd.f32 %v317_v29, %v307_v15  ;;  %v318_v47 = vmul.f32 %v286_v14, %v548_v5  ;;  %v319_v48 = vmul.f32 %v286_v14, %v550_v6 }
 0x2da   :  { %v299_v20 = vpop.permute.xlu1 %298  ;;  %v356_v21 = vpop.permute.xlu0 %355 }
 0x2db   :  { %v377_v24 = vadd.f32 %v369_v16, %v356_v21  ;;  %v378_v25 = vadd.f32 %v370_v17, %v356_v21  ;;  %v322_v41 = vadd.f32 %v314_v38, %v299_v20  ;;  %v323_v42 = vadd.f32 %v315_v0, %v299_v20 }
 0x2dd   :  { %v385_v30 = vmax.f32 %v320_v22, %v377_v24  ;;  %v386_v31 = vmax.f32 %v321_v23, %v378_v25 }
 0x2de   :  { %v311_v32 = vpop.permute.xlu1 %310  ;;  %v364_v2 = vpop.permute.xlu0 %363 }
 0x2df   :  { %393 = vst [vmem:[#allocation5] sm:$0xff] %v385_v30  ;;  %394 = vst [vmem:[#allocation5 + $0x8] sm:$0xff] %v386_v31  ;;  %v381_v34 = vadd.f32 %v373_v26, %v364_v2  ;;  %v382_v35 = vadd.f32 %v374_v27, %v364_v2  ;;  %v326_v50 = vadd.f32 %v318_v47, %v311_v32 }
 0x2e0   :  { %v327_v51 = vadd.f32 %v319_v48, %v311_v32 }
 0x2e1   :  { %v389_v39 = vmax.f32 %v324_v33, %v381_v34  ;;  %v390_v1 = vmax.f32 %v325_v4, %v382_v35 }
 0x2e2   :  { %v360_v40 = vpop.permute.xlu1 %359 }
 0x2e3   :  { %397 = vst [vmem:[#allocation5 + $0x20] sm:$0xff] %v389_v39  ;;  %398 = vst [vmem:[#allocation5 + $0x28] sm:$0xff] %v390_v1  ;;  %v379_v43 = vadd.f32 %v371_v36, %v360_v40  ;;  %v380_v44 = vadd.f32 %v372_v37, %v360_v40 }
 0x2e5   :  { %v387_v8 = vmax.f32 %v322_v41, %v379_v43  ;;  %v388_v49 = vmax.f32 %v323_v42, %v380_v44 }
 0x2e6   :  { %v368_v9 = vpop.permute.xlu1 %367 }
 0x2e7   :  { %395 = vst [vmem:[#allocation5 + $0x10] sm:$0xff] %v387_v8  ;;  %396 = vst [vmem:[#allocation5 + $0x18] sm:$0xff] %v388_v49  ;;  %v383_v52 = vadd.f32 %v375_v45, %v368_v9  ;;  %v384_v53 = vadd.f32 %v376_v46, %v368_v9 }
 0x2e9   :  { %v391_v54 = vmax.f32 %v326_v50, %v383_v52  ;;  %v392_v55 = vmax.f32 %v327_v51, %v384_v53 }
 0x2eb   :  { %399 = vst [vmem:[#allocation5 + $0x30] sm:$0xff] %v391_v54  ;;  %400 = vst [vmem:[#allocation5 + $0x38] sm:$0xff] %v392_v55 }
 0x2ec   :  { %483 = shalt.err (!%p480_p9)
}
 0x2ed   :  { %412 = dma.vmem_to_hbm [thread:$0]  %s407_s3, 1024, %s604_s5, [#allocation4], %s497_s21, %s497_s21, %s498_s22  }
 0x2ee   :  { %494 = dma.done.wait [#allocation4], 1024  }
 0x2ef   :  { %495 = vsyncadd [#allocation4], 4294966272 }
 0x2f0   :  { %416 = vsyncpa [#allocation3], 1 }
 0x2f1   :  { %417 = vsyncpa [#allocation4], 1 }

</bundles_post_ra>
